<compile_context>
chip_gen: v7x
topology: tpu7x:2x2x1
jax: 0.10.0
libtpu: 0.0.40
codegen_flags: <defaults>
</compile_context>

<pallas_src>
import jax
import jax.numpy as jnp
from jax.experimental import pallas as pl
from jax.experimental.pallas import tpu as pltpu

# ---- "args" hyper-parameters (small, consistent with the module) ----
SEQ = 8          # RNN sequence length
D_IN = 8         # args.input_DF_size
H_DF = 32        # args.hidden_DF_size
O2 = 8           # args.out_2_size
V_IN = 8         # args.input_VLT_size
H_VLT = 32       # args.hidden_VLT_size
O3 = 8           # args.out_3_size
I_SIZE = O2 + O3  # args.input_I_size (1-D concat matches layer_3 fan-in)
H_I = 32         # args.hidden_I_size
INV = 7          # args.init_inventory_size
O1 = 4           # args.out_1_size

LANES = 128      # lane-dense packing width


def integration_kernel(x_ref, w_ref, b_ref, out_ref):
    """x_ref: (SEQ+1, 128) inputs, w_ref: (9,128,128) weights, b_ref: (8,128) biases."""
    f32 = jnp.float32

    x_rnn = x_ref[pl.ds(0, SEQ), :]       # rows 0..SEQ-1: [x_dm | x_dr | 0]
    x_misc = x_ref[pl.ds(SEQ, 1), :]      # row SEQ: [vlt_lr | vlt_lw | inv | q | 0]

    # ---- DF submodules: two tanh-RNNs interleaved via block-diagonal weights ----
    # Hoisted input projection with folded (b_ih + b_hh):
    xw = (jnp.dot(x_rnn, w_ref[0], preferred_element_type=f32)
          + b_ref[pl.ds(0, 1), :])                                   # (SEQ, 128)
    w_hh = w_ref[1]                                                   # block-diag (128,128)
    h = jnp.zeros((1, LANES), f32)                                    # [h_dm | h_dr | 0]
    for t in range(SEQ):                                              # static unroll
        h = jnp.tanh(xw[t:t + 1, :]
                     + jnp.dot(h, w_hh, preferred_element_type=f32))
    # last hidden -> per-branch Linear (block-diagonal)
    out2_cat = (jnp.dot(h, w_ref[2], preferred_element_type=f32)
                + b_ref[pl.ds(1, 1), :])          # lanes 0..7 = dm, 8..15 = dr

    # ---- VLT submodules: two MLPs, block-diagonal; dropout = identity ----
    hid = jnp.maximum(jnp.dot(x_misc, w_ref[3], preferred_element_type=f32)
                      + b_ref[pl.ds(2, 1), :], 0.0)
    out3_cat = (jnp.dot(hid, w_ref[4], preferred_element_type=f32)
                + b_ref[pl.ds(3, 1), :])          # lanes 0..7 = lr, 8..15 = lw

    # ---- layer_3 on cat(out2_dm, out2_dr, out3_lr, out3_lw): partial matmuls ----
    l3 = jnp.maximum(jnp.dot(out2_cat, w_ref[5], preferred_element_type=f32)
                     + jnp.dot(out3_cat, w_ref[6], preferred_element_type=f32)
                     + b_ref[pl.ds(4, 1), :], 0.0)   # lanes 0..31

    # ---- layer_4 on cat(l3, init_inventory, input_Q): partial matmuls ----
    out1 = (jnp.dot(l3, w_ref[7], preferred_element_type=f32)
            + jnp.dot(x_misc, w_ref[8], preferred_element_type=f32)
            + b_ref[pl.ds(5, 1), :])                 # lanes 0..3

    # single lane-dense output buffer: row0=out1, row1=out2_cat, row2=out3_cat
    out_ref[pl.ds(0, 1), :] = out1
    out_ref[pl.ds(1, 1), :] = out2_cat
    out_ref[pl.ds(2, 1), :] = out3_cat


def init_params(key):
    """Deterministic parameter init matching the PyTorch module's shapes."""
    ks = list(jax.random.split(key, 32))
    kit = iter(ks)

    def unif(shape, fan_in):
        bound = 1.0 / jnp.sqrt(float(fan_in))
        return jax.random.uniform(next(kit), shape, jnp.float32, -bound, bound)

    def df_params():
        return dict(
            w_ih=unif((H_DF, D_IN), H_DF), w_hh=unif((H_DF, H_DF), H_DF),
            b_ih=unif((H_DF,), H_DF), b_hh=unif((H_DF,), H_DF),
            w_lin=unif((O2, H_DF), H_DF), b_lin=unif((O2,), H_DF))

    def vlt_params():
        return dict(
            w1=unif((H_VLT, V_IN), V_IN), b1=unif((H_VLT,), V_IN),
            w2=unif((O3, H_VLT), H_VLT), b2=unif((O3,), H_VLT))

    return dict(
        dm=df_params(), dr=df_params(), lr=vlt_params(), lw=vlt_params(),
        w3=unif((H_I, 2 * I_SIZE), 2 * I_SIZE), b3=unif((H_I,), 2 * I_SIZE),
        w4=unif((O1, H_I + INV + 1), H_I + INV + 1),
        b4=unif((O1,), H_I + INV + 1))


def pack_params(params):
    """One-time packing: transposes/splits/bias-folds into two lane-dense slabs."""
    f32 = jnp.float32
    dm, dr, lr, lw = params['dm'], params['dr'], params['lr'], params['lw']

    def zmat():
        return jnp.zeros((LANES, LANES), f32)

    W_ih = (zmat().at[0:D_IN, 0:H_DF].set(dm['w_ih'].T)
                  .at[D_IN:2 * D_IN, H_DF:2 * H_DF].set(dr['w_ih'].T))
    W_hh = (zmat().at[0:H_DF, 0:H_DF].set(dm['w_hh'].T)
                  .at[H_DF:2 * H_DF, H_DF:2 * H_DF].set(dr['w_hh'].T))
    W_dfl = (zmat().at[0:H_DF, 0:O2].set(dm['w_lin'].T)
                   .at[H_DF:2 * H_DF, O2:2 * O2].set(dr['w_lin'].T))
    W_v1 = (zmat().at[0:V_IN, 0:H_VLT].set(lr['w1'].T)
                  .at[V_IN:2 * V_IN, H_VLT:2 * H_VLT].set(lw['w1'].T))
    W_v2 = (zmat().at[0:H_VLT, 0:O3].set(lr['w2'].T)
                  .at[H_VLT:2 * H_VLT, O3:2 * O3].set(lw['w2'].T))
    w3t = params['w3'].T                              # (2*I_SIZE, H_I)
    W3a = zmat().at[0:2 * O2, 0:H_I].set(w3t[0:2 * O2])
    W3b = zmat().at[0:2 * O3, 0:H_I].set(w3t[2 * O2:2 * O2 + 2 * O3])
    w4t = params['w4'].T                              # (H_I+INV+1, O1)
    W4a = zmat().at[0:H_I, 0:O1].set(w4t[0:H_I])
    W4b = zmat().at[2 * V_IN:2 * V_IN + INV + 1, 0:O1].set(w4t[H_I:H_I + INV + 1])

    w_slab = jnp.stack([W_ih, W_hh, W_dfl, W_v1, W_v2, W3a, W3b, W4a, W4b])

    b_slab = (jnp.zeros((8, LANES), f32)
              .at[0, 0:H_DF].set(dm['b_ih'] + dm['b_hh'])       # folded RNN biases
              .at[0, H_DF:2 * H_DF].set(dr['b_ih'] + dr['b_hh'])
              .at[1, 0:O2].set(dm['b_lin'])
              .at[1, O2:2 * O2].set(dr['b_lin'])
              .at[2, 0:H_VLT].set(lr['b1'])
              .at[2, H_VLT:2 * H_VLT].set(lw['b1'])
              .at[3, 0:O3].set(lr['b2'])
              .at[3, O3:2 * O3].set(lw['b2'])
              .at[4, 0:H_I].set(params['b3'])
              .at[5, 0:O1].set(params['b4']))
    return w_slab, b_slab


@jax.jit
def integration_forward(packed, input_DF_dm, input_VLT_lr, init_inventory,
                        input_Q, input_DF_dr, input_VLT_lw):
    w_slab, b_slab = packed
    f32 = jnp.float32

    # Single lane-dense input slab (one DMA): rows 0..SEQ-1 RNN inputs, row SEQ misc.
    x_slab = (jnp.zeros((SEQ + 1, LANES), f32)
              .at[0:SEQ, 0:D_IN].set(input_DF_dm[0].astype(f32))
              .at[0:SEQ, D_IN:2 * D_IN].set(input_DF_dr[0].astype(f32))
              .at[SEQ, 0:V_IN].set(input_VLT_lr.astype(f32))
              .at[SEQ, V_IN:2 * V_IN].set(input_VLT_lw.astype(f32))
              .at[SEQ, 2 * V_IN:2 * V_IN + INV].set(init_inventory.astype(f32))
              .at[SEQ, 2 * V_IN + INV].set(input_Q[0].astype(f32)))

    vmem = pl.BlockSpec(memory_space=pltpu.MemorySpace.VMEM)
    out = pl.pallas_call(
        integration_kernel,
        out_shape=jax.ShapeDtypeStruct((3, LANES), f32),
        in_specs=[vmem, vmem, vmem],
        out_specs=vmem,
    )(x_slab, w_slab, b_slab)

    out1 = out[0, 0:O1]           # layer_4 output
    out2 = out[1, O2:2 * O2]      # out_2 = out_2_dr
    out3 = out[2, O3:2 * O3]      # out_3 = out_3_lw
    return out1, out2, out3


def reference_forward(params, input_DF_dm, input_VLT_lr, init_inventory,
                      input_Q, input_DF_dr, input_VLT_lw):
    """Pure-JAX mirror of the PyTorch forward (eval mode) for verification."""
    def df(x, p):
        h = jnp.zeros((1, H_DF), jnp.float32)
        for t in range(SEQ):
            h = jnp.tanh(x[:, t, :] @ p['w_ih'].T + p['b_ih']
                         + h @ p['w_hh'].T + p['b_hh'])
        return (h @ p['w_lin'].T + p['b_lin']).reshape(-1)

    def vlt(x, p):
        h = jnp.maximum(x @ p['w1'].T + p['b1'], 0.0)
        return h @ p['w2'].T + p['b2']

    out2_dm = df(input_DF_dm, params['dm'])
    out2_dr = df(input_DF_dr, params['dr'])
    out3_lr = vlt(input_VLT_lr, params['lr'])
    out3_lw = vlt(input_VLT_lw, params['lw'])
    l3_in = jnp.concatenate([out2_dm, out2_dr, out3_lr, out3_lw])
    l3 = jnp.maximum(l3_in @ params['w3'].T + params['b3'], 0.0)
    l4_in = jnp.concatenate([l3, init_inventory, input_Q])
    out1 = l4_in @ params['w4'].T + params['b4']
    return out1, out2_dr, out3_lw


if __name__ == "__main__":
    key = jax.random.PRNGKey(0)
    kp, k1, k2, k3, k4, k5, k6 = jax.random.split(key, 7)
    params = init_params(kp)
    packed = pack_params(params)                  # one-time packing (not per-call)
    packed = jax.block_until_ready(packed)

    input_DF_dm = jax.random.normal(k1, (1, SEQ, D_IN), jnp.float32)
    input_DF_dr = jax.random.normal(k2, (1, SEQ, D_IN), jnp.float32)
    input_VLT_lr = jax.random.normal(k3, (V_IN,), jnp.float32)
    input_VLT_lw = jax.random.normal(k4, (V_IN,), jnp.float32)
    init_inventory = jax.random.normal(k5, (INV,), jnp.float32)
    input_Q = jax.random.normal(k6, (1,), jnp.float32)

    out1, out2, out3 = integration_forward(
        packed, input_DF_dm, input_VLT_lr, init_inventory, input_Q,
        input_DF_dr, input_VLT_lw)
    jax.block_until_ready((out1, out2, out3))

    r1, r2, r3 = reference_forward(
        params, input_DF_dm, input_VLT_lr, init_inventory, input_Q,
        input_DF_dr, input_VLT_lw)
    assert out1.shape == (O1,) and out2.shape == (O2,) and out3.shape == (O3,)
    assert jnp.allclose(out1, r1, atol=1e-5, rtol=1e-5)
    assert jnp.allclose(out2, r2, atol=1e-5, rtol=1e-5)
    assert jnp.allclose(out3, r3, atol=1e-5, rtol=1e-5)
    print("KERNEL_OK")
</pallas_src>

<mosaic_0001>
module attributes {stable_mosaic.version = 11 : i64} {
  func.func @integration_kernel(%arg0: memref<9x128xf32, #tpu.memory_space<vmem>>, %arg1: memref<9x128x128xf32, #tpu.memory_space<vmem>>, %arg2: memref<8x128xf32, #tpu.memory_space<vmem>>, %arg3: memref<3x128xf32, #tpu.memory_space<vmem>>) attributes {dimension_semantics = [], scalar_prefetch = 0 : i64, scratch_operands = 0 : i64, tpu.core_type = #tpu.core_type<tc>} {
    %c0 = arith.constant 0 : index
    %c0_0 = arith.constant 0 : index
    %0 = vector.load %arg0[%c0, %c0_0] : memref<9x128xf32, #tpu.memory_space<vmem>>, vector<8x128xf32>
    %c8 = arith.constant 8 : index
    %c0_1 = arith.constant 0 : index
    %1 = vector.load %arg0[%c8, %c0_1] : memref<9x128xf32, #tpu.memory_space<vmem>>, vector<1x128xf32>
    %c0_2 = arith.constant 0 : index
    %c0_3 = arith.constant 0 : index
    %c0_4 = arith.constant 0 : index
    %2 = vector.load %arg1[%c0_2, %c0_3, %c0_4] : memref<9x128x128xf32, #tpu.memory_space<vmem>>, vector<1x128x128xf32>
    %3 = vector.shape_cast %2 : vector<1x128x128xf32> to vector<128x128xf32>
    %cst = arith.constant dense<0.000000e+00> : vector<8x128xf32>
    %4 = tpu.matmul %0, %3, %cst {dimension_numbers = #tpu.dot_dimension_numbers<[1], [0], [0], [1], [0, 0, 1, 1], [], []>} : vector<8x128xf32>, vector<128x128xf32>, vector<8x128xf32> -> vector<8x128xf32>
    %c0_5 = arith.constant 0 : index
    %c0_6 = arith.constant 0 : index
    %5 = vector.load %arg2[%c0_5, %c0_6] : memref<8x128xf32, #tpu.memory_space<vmem>>, vector<1x128xf32>
    %6 = vector.broadcast %5 : vector<1x128xf32> to vector<8x128xf32>
    %7 = arith.addf %4, %6 : vector<8x128xf32>
    %c1 = arith.constant 1 : index
    %c0_7 = arith.constant 0 : index
    %c0_8 = arith.constant 0 : index
    %8 = vector.load %arg1[%c1, %c0_7, %c0_8] : memref<9x128x128xf32, #tpu.memory_space<vmem>>, vector<1x128x128xf32>
    %9 = vector.shape_cast %8 : vector<1x128x128xf32> to vector<128x128xf32>
    %cst_9 = arith.constant 0.000000e+00 : f32
    %10 = vector.broadcast %cst_9 : f32 to vector<1x128xf32>
    %11 = vector.extract_strided_slice %7 {offsets = [0, 0], sizes = [1, 128], strides = [1, 1]} : vector<8x128xf32> to vector<1x128xf32>
    %cst_10 = arith.constant dense<0.000000e+00> : vector<1x128xf32>
    %12 = tpu.matmul %10, %9, %cst_10 {dimension_numbers = #tpu.dot_dimension_numbers<[1], [0], [0], [1], [0, 0, 1, 1], [], []>} : vector<1x128xf32>, vector<128x128xf32>, vector<1x128xf32> -> vector<1x128xf32>
    %13 = arith.addf %11, %12 : vector<1x128xf32>
    %14 = math.tanh %13 : vector<1x128xf32>
    %15 = vector.extract_strided_slice %7 {offsets = [1, 0], sizes = [1, 128], strides = [1, 1]} : vector<8x128xf32> to vector<1x128xf32>
    %cst_11 = arith.constant dense<0.000000e+00> : vector<1x128xf32>
    %16 = tpu.matmul %14, %9, %cst_11 {dimension_numbers = #tpu.dot_dimension_numbers<[1], [0], [0], [1], [0, 0, 1, 1], [], []>} : vector<1x128xf32>, vector<128x128xf32>, vector<1x128xf32> -> vector<1x128xf32>
    %17 = arith.addf %15, %16 : vector<1x128xf32>
    %18 = math.tanh %17 : vector<1x128xf32>
    %19 = vector.extract_strided_slice %7 {offsets = [2, 0], sizes = [1, 128], strides = [1, 1]} : vector<8x128xf32> to vector<1x128xf32>
    %cst_12 = arith.constant dense<0.000000e+00> : vector<1x128xf32>
    %20 = tpu.matmul %18, %9, %cst_12 {dimension_numbers = #tpu.dot_dimension_numbers<[1], [0], [0], [1], [0, 0, 1, 1], [], []>} : vector<1x128xf32>, vector<128x128xf32>, vector<1x128xf32> -> vector<1x128xf32>
    %21 = arith.addf %19, %20 : vector<1x128xf32>
    %22 = math.tanh %21 : vector<1x128xf32>
    %23 = vector.extract_strided_slice %7 {offsets = [3, 0], sizes = [1, 128], strides = [1, 1]} : vector<8x128xf32> to vector<1x128xf32>
    %cst_13 = arith.constant dense<0.000000e+00> : vector<1x128xf32>
    %24 = tpu.matmul %22, %9, %cst_13 {dimension_numbers = #tpu.dot_dimension_numbers<[1], [0], [0], [1], [0, 0, 1, 1], [], []>} : vector<1x128xf32>, vector<128x128xf32>, vector<1x128xf32> -> vector<1x128xf32>
    %25 = arith.addf %23, %24 : vector<1x128xf32>
    %26 = math.tanh %25 : vector<1x128xf32>
    %27 = vector.extract_strided_slice %7 {offsets = [4, 0], sizes = [1, 128], strides = [1, 1]} : vector<8x128xf32> to vector<1x128xf32>
    %cst_14 = arith.constant dense<0.000000e+00> : vector<1x128xf32>
    %28 = tpu.matmul %26, %9, %cst_14 {dimension_numbers = #tpu.dot_dimension_numbers<[1], [0], [0], [1], [0, 0, 1, 1], [], []>} : vector<1x128xf32>, vector<128x128xf32>, vector<1x128xf32> -> vector<1x128xf32>
    %29 = arith.addf %27, %28 : vector<1x128xf32>
    %30 = math.tanh %29 : vector<1x128xf32>
    %31 = vector.extract_strided_slice %7 {offsets = [5, 0], sizes = [1, 128], strides = [1, 1]} : vector<8x128xf32> to vector<1x128xf32>
    %cst_15 = arith.constant dense<0.000000e+00> : vector<1x128xf32>
    %32 = tpu.matmul %30, %9, %cst_15 {dimension_numbers = #tpu.dot_dimension_numbers<[1], [0], [0], [1], [0, 0, 1, 1], [], []>} : vector<1x128xf32>, vector<128x128xf32>, vector<1x128xf32> -> vector<1x128xf32>
    %33 = arith.addf %31, %32 : vector<1x128xf32>
    %34 = math.tanh %33 : vector<1x128xf32>
    %35 = vector.extract_strided_slice %7 {offsets = [6, 0], sizes = [1, 128], strides = [1, 1]} : vector<8x128xf32> to vector<1x128xf32>
    %cst_16 = arith.constant dense<0.000000e+00> : vector<1x128xf32>
    %36 = tpu.matmul %34, %9, %cst_16 {dimension_numbers = #tpu.dot_dimension_numbers<[1], [0], [0], [1], [0, 0, 1, 1], [], []>} : vector<1x128xf32>, vector<128x128xf32>, vector<1x128xf32> -> vector<1x128xf32>
    %37 = arith.addf %35, %36 : vector<1x128xf32>
    %38 = math.tanh %37 : vector<1x128xf32>
    %39 = vector.extract_strided_slice %7 {offsets = [7, 0], sizes = [1, 128], strides = [1, 1]} : vector<8x128xf32> to vector<1x128xf32>
    %cst_17 = arith.constant dense<0.000000e+00> : vector<1x128xf32>
    %40 = tpu.matmul %38, %9, %cst_17 {dimension_numbers = #tpu.dot_dimension_numbers<[1], [0], [0], [1], [0, 0, 1, 1], [], []>} : vector<1x128xf32>, vector<128x128xf32>, vector<1x128xf32> -> vector<1x128xf32>
    %41 = arith.addf %39, %40 : vector<1x128xf32>
    %42 = math.tanh %41 : vector<1x128xf32>
    %c2 = arith.constant 2 : index
    %c0_18 = arith.constant 0 : index
    %c0_19 = arith.constant 0 : index
    %43 = vector.load %arg1[%c2, %c0_18, %c0_19] : memref<9x128x128xf32, #tpu.memory_space<vmem>>, vector<1x128x128xf32>
    %44 = vector.shape_cast %43 : vector<1x128x128xf32> to vector<128x128xf32>
    %cst_20 = arith.constant dense<0.000000e+00> : vector<1x128xf32>
    %45 = tpu.matmul %42, %44, %cst_20 {dimension_numbers = #tpu.dot_dimension_numbers<[1], [0], [0], [1], [0, 0, 1, 1], [], []>} : vector<1x128xf32>, vector<128x128xf32>, vector<1x128xf32> -> vector<1x128xf32>
    %c1_21 = arith.constant 1 : index
    %c0_22 = arith.constant 0 : index
    %46 = vector.load %arg2[%c1_21, %c0_22] : memref<8x128xf32, #tpu.memory_space<vmem>>, vector<1x128xf32>
    %47 = arith.addf %45, %46 : vector<1x128xf32>
    %c3 = arith.constant 3 : index
    %c0_23 = arith.constant 0 : index
    %c0_24 = arith.constant 0 : index
    %48 = vector.load %arg1[%c3, %c0_23, %c0_24] : memref<9x128x128xf32, #tpu.memory_space<vmem>>, vector<1x128x128xf32>
    %49 = vector.shape_cast %48 : vector<1x128x128xf32> to vector<128x128xf32>
    %cst_25 = arith.constant dense<0.000000e+00> : vector<1x128xf32>
    %50 = tpu.matmul %1, %49, %cst_25 {dimension_numbers = #tpu.dot_dimension_numbers<[1], [0], [0], [1], [0, 0, 1, 1], [], []>} : vector<1x128xf32>, vector<128x128xf32>, vector<1x128xf32> -> vector<1x128xf32>
    %c2_26 = arith.constant 2 : index
    %c0_27 = arith.constant 0 : index
    %51 = vector.load %arg2[%c2_26, %c0_27] : memref<8x128xf32, #tpu.memory_space<vmem>>, vector<1x128xf32>
    %52 = arith.addf %50, %51 : vector<1x128xf32>
    %cst_28 = arith.constant 0.000000e+00 : f32
    %53 = vector.broadcast %cst_28 : f32 to vector<1x128xf32>
    %54 = arith.maximumf %52, %53 : vector<1x128xf32>
    %c4 = arith.constant 4 : index
    %c0_29 = arith.constant 0 : index
    %c0_30 = arith.constant 0 : index
    %55 = vector.load %arg1[%c4, %c0_29, %c0_30] : memref<9x128x128xf32, #tpu.memory_space<vmem>>, vector<1x128x128xf32>
    %56 = vector.shape_cast %55 : vector<1x128x128xf32> to vector<128x128xf32>
    %cst_31 = arith.constant dense<0.000000e+00> : vector<1x128xf32>
    %57 = tpu.matmul %54, %56, %cst_31 {dimension_numbers = #tpu.dot_dimension_numbers<[1], [0], [0], [1], [0, 0, 1, 1], [], []>} : vector<1x128xf32>, vector<128x128xf32>, vector<1x128xf32> -> vector<1x128xf32>
    %c3_32 = arith.constant 3 : index
    %c0_33 = arith.constant 0 : index
    %58 = vector.load %arg2[%c3_32, %c0_33] : memref<8x128xf32, #tpu.memory_space<vmem>>, vector<1x128xf32>
    %59 = arith.addf %57, %58 : vector<1x128xf32>
    %c5 = arith.constant 5 : index
    %c0_34 = arith.constant 0 : index
    %c0_35 = arith.constant 0 : index
    %60 = vector.load %arg1[%c5, %c0_34, %c0_35] : memref<9x128x128xf32, #tpu.memory_space<vmem>>, vector<1x128x128xf32>
    %61 = vector.shape_cast %60 : vector<1x128x128xf32> to vector<128x128xf32>
    %cst_36 = arith.constant dense<0.000000e+00> : vector<1x128xf32>
    %62 = tpu.matmul %47, %61, %cst_36 {dimension_numbers = #tpu.dot_dimension_numbers<[1], [0], [0], [1], [0, 0, 1, 1], [], []>} : vector<1x128xf32>, vector<128x128xf32>, vector<1x128xf32> -> vector<1x128xf32>
    %c6 = arith.constant 6 : index
    %c0_37 = arith.constant 0 : index
    %c0_38 = arith.constant 0 : index
    %63 = vector.load %arg1[%c6, %c0_37, %c0_38] : memref<9x128x128xf32, #tpu.memory_space<vmem>>, vector<1x128x128xf32>
    %64 = vector.shape_cast %63 : vector<1x128x128xf32> to vector<128x128xf32>
    %cst_39 = arith.constant dense<0.000000e+00> : vector<1x128xf32>
    %65 = tpu.matmul %59, %64, %cst_39 {dimension_numbers = #tpu.dot_dimension_numbers<[1], [0], [0], [1], [0, 0, 1, 1], [], []>} : vector<1x128xf32>, vector<128x128xf32>, vector<1x128xf32> -> vector<1x128xf32>
    %66 = arith.addf %62, %65 : vector<1x128xf32>
    %c4_40 = arith.constant 4 : index
    %c0_41 = arith.constant 0 : index
    %67 = vector.load %arg2[%c4_40, %c0_41] : memref<8x128xf32, #tpu.memory_space<vmem>>, vector<1x128xf32>
    %68 = arith.addf %66, %67 : vector<1x128xf32>
    %cst_42 = arith.constant 0.000000e+00 : f32
    %69 = vector.broadcast %cst_42 : f32 to vector<1x128xf32>
    %70 = arith.maximumf %68, %69 : vector<1x128xf32>
    %c7 = arith.constant 7 : index
    %c0_43 = arith.constant 0 : index
    %c0_44 = arith.constant 0 : index
    %71 = vector.load %arg1[%c7, %c0_43, %c0_44] : memref<9x128x128xf32, #tpu.memory_space<vmem>>, vector<1x128x128xf32>
    %72 = vector.shape_cast %71 : vector<1x128x128xf32> to vector<128x128xf32>
    %cst_45 = arith.constant dense<0.000000e+00> : vector<1x128xf32>
    %73 = tpu.matmul %70, %72, %cst_45 {dimension_numbers = #tpu.dot_dimension_numbers<[1], [0], [0], [1], [0, 0, 1, 1], [], []>} : vector<1x128xf32>, vector<128x128xf32>, vector<1x128xf32> -> vector<1x128xf32>
    %c8_46 = arith.constant 8 : index
    %c0_47 = arith.constant 0 : index
    %c0_48 = arith.constant 0 : index
    %74 = vector.load %arg1[%c8_46, %c0_47, %c0_48] : memref<9x128x128xf32, #tpu.memory_space<vmem>>, vector<1x128x128xf32>
    %75 = vector.shape_cast %74 : vector<1x128x128xf32> to vector<128x128xf32>
    %cst_49 = arith.constant dense<0.000000e+00> : vector<1x128xf32>
    %76 = tpu.matmul %1, %75, %cst_49 {dimension_numbers = #tpu.dot_dimension_numbers<[1], [0], [0], [1], [0, 0, 1, 1], [], []>} : vector<1x128xf32>, vector<128x128xf32>, vector<1x128xf32> -> vector<1x128xf32>
    %77 = arith.addf %73, %76 : vector<1x128xf32>
    %c5_50 = arith.constant 5 : index
    %c0_51 = arith.constant 0 : index
    %78 = vector.load %arg2[%c5_50, %c0_51] : memref<8x128xf32, #tpu.memory_space<vmem>>, vector<1x128xf32>
    %79 = arith.addf %77, %78 : vector<1x128xf32>
    %c0_52 = arith.constant 0 : index
    %c0_53 = arith.constant 0 : index
    %80 = vector.load %arg3[%c0_52, %c0_53] : memref<3x128xf32, #tpu.memory_space<vmem>>, vector<1x128xf32>
    tpu.vector_store %arg3[%c0_52, %c0_53], %79 {strides = array<i32>} : memref<3x128xf32, #tpu.memory_space<vmem>>, vector<1x128xf32>,
    %c1_54 = arith.constant 1 : index
    %c0_55 = arith.constant 0 : index
    %81 = vector.load %arg3[%c1_54, %c0_55] : memref<3x128xf32, #tpu.memory_space<vmem>>, vector<1x128xf32>
    tpu.vector_store %arg3[%c1_54, %c0_55], %47 {strides = array<i32>} : memref<3x128xf32, #tpu.memory_space<vmem>>, vector<1x128xf32>,
    %c2_56 = arith.constant 2 : index
    %c0_57 = arith.constant 0 : index
    %82 = vector.load %arg3[%c2_56, %c0_57] : memref<3x128xf32, #tpu.memory_space<vmem>>, vector<1x128xf32>
    tpu.vector_store %arg3[%c2_56, %c0_57], %59 {strides = array<i32>} : memref<3x128xf32, #tpu.memory_space<vmem>>, vector<1x128xf32>,
    return
  }
}

</mosaic_0001>

<bundles_post_ra>
// kernel: integration_forward.1
= control target key start
LH: loop header
LB: loop body
LE: loop exit
PB: predicated region body
PF: predicated region fallthrough
CT: control target
= control target key end

     0   :  { %8 = vsyncpa [#allocation3], 0  ;;  %s2645_s12 = smov [#allocation2]   ;;  %s2971_s0 = inlined_call_operand.vmem [shape: f32[9,128], index: 0, kind: input, shape index: {}]   ;;  %s2972_s1 = inlined_call_operand.hbm [shape: f32[9,128,128], index: 1, kind: input, shape index: {}]   ;;  %s2973_s2 = inlined_call_operand.vmem [shape: f32[8,128], index: 2, kind: input, shape index: {}]   ;;  %s2974_s3 = inlined_call_operand.vmem [shape: f32[3,128], index: 3, kind: output, shape index: {}]  }
   0x1   :  { %s16_s13 = sshll.u32 %s2645_s12, 4  ;;  %s2621_s16 = scalar_lea.hbm %s2972_s1, 18432  ;;  %s17_s13 = int_to_ptr.vmem [resolvable:$true] %s16_s13 }
   0x2   :  { %p2622_p0 = scmp.ne.s32.totalorder %s2972_s1, %s2621_s16  ;;  %p2625_p1 = scmp.lt.u32.totalorder %s2621_s16, %s2972_s1 }
   0x4   :  { %p2627_p2 = pnand %p2625_p1, %p2622_p0 }
   0x6   :  { %2630 = shalt.err (!%p2627_p2)
}
   0x7   :  { %s2631_s21 = scalar_lea.vmem %s17_s13, 18432  ;;  %p2636_p4 = scmp.lt.s32.totalorder %s17_s13, %s17_s13 }
   0x8   :  { %p2632_p3 = scmp.ne.s32.totalorder %s17_s13, %s2631_s21  ;;  %p2637_p5 = scmp.lt.s32.totalorder %s2631_s21, %s2631_s21 }
   0xa   :  { %p2638_p6 = por %p2637_p5, %p2636_p4 }
   0xc   :  { %p2639_p7 = pnand %p2638_p6, %p2632_p3 }
   0xe   :  { %2642 = shalt.err (!%p2639_p7)
}
   0xf   :  { %s2646_s22 = smov 128   ;;  %s2647_s23 = smov 8  }
  0x10   :  { %22 = dma.hbm_to_vmem [thread:$0]  %s2972_s1, 18432, %s17_s13, [#allocation3], %s2646_s22, %s2646_s22, %s2647_s23  }
  0x11   :  { %2643 = dma.done.wait [#allocation3], 18432  }
  0x12   :  { %2644 = vsyncadd [#allocation3], 4294948864  ;;  %v2648_v0 = vmov 0.0|0.0   ;;  %vm2649_vm0 = vmmov 0   ;;  %v2650_v1 = vmov 0.0   ;;  %v30_v2 = vld [vmem:[#allocation2] sm:$0xff] }
  0x13   :  { %2215 = vmatprep.subr.bf16.mxu0 %v2648_v0  ;;  %2239 = vmatprep.subr.bf16.mxu1 %v2648_v0  ;;  %v31_v3 = vld [vmem:[#allocation2 + $0x8] sm:$0xff]  ;;  %v122_v4 = vld [vmem:[#allocation2 + $0x80] sm:$0xff]  ;;  %v32_v7 = vld [vmem:[#allocation2 + $0x10] sm:$0xff] }
  0x14   :  { %1687 = vmatprep.mubr.msk.f32.mxu0 %vm2649_vm0, %v2650_v1  ;;  %1722 = vmatprep.mubr.msk.f32.mxu1 %vm2649_vm0, %v2650_v1  ;;  %v2216_v5 = vpack.c.bf16 %v31_v3, %v30_v2  ;;  %v123_v6 = vld [vmem:[#allocation2 + $0x88] sm:$0xff]  ;;  %v33_v8 = vld [vmem:[#allocation2 + $0x18] sm:$0xff]  ;;  %v124_v10 = vld [vmem:[#allocation2 + $0x90] sm:$0xff] }
  0x15   :  { %v2689_v9 = vpack.c.bf16 %v123_v6, %v122_v4  ;;  %v125_v11 = vld [vmem:[#allocation2 + $0x98] sm:$0xff]  ;;  %v2219_v12 = vpack.c.bf16 %v33_v8, %v32_v7  ;;  %v34_v14 = vld [vmem:[#allocation2 + $0x20] sm:$0xff]  ;;  %v35_v15 = vld [vmem:[#allocation2 + $0x28] sm:$0xff] }
  0x16   :  { %2217 = vmatpush3.bf16.msra.mxu0 %v2216_v5  ;;  %v2693_v13 = vpack.c.bf16 %v125_v11, %v124_v10  ;;  %v126_v16 = vld [vmem:[#allocation2 + $0xa0] sm:$0xff]  ;;  %v127_v17 = vld [vmem:[#allocation2 + $0xa8] sm:$0xff]  ;;  %v2222_v18 = vpack.c.bf16 %v35_v15, %v34_v14  ;;  %v36_v20 = vld [vmem:[#allocation2 + $0x30] sm:$0xff] }
  0x17   :  { %2241 = vmatpush3.bf16.msra.mxu1 %v2689_v9  ;;  %2218 = vmatprep.subr.bf16.mxu0 %v2648_v0  ;;  %v2698_v19 = vpack.c.bf16 %v127_v17, %v126_v16  ;;  %v37_v21 = vld [vmem:[#allocation2 + $0x38] sm:$0xff]  ;;  %v128_v22 = vld [vmem:[#allocation2 + $0xb0] sm:$0xff]  ;;  %v38_v26 = vld [vmem:[#allocation2 + $0x40] sm:$0xff] }
  0x18   :  { %2242 = vmatprep.subr.bf16.mxu1 %v2648_v0  ;;  %v129_v23 = vld [vmem:[#allocation2 + $0xb8] sm:$0xff]  ;;  %v2225_v24 = vpack.c.bf16 %v37_v21, %v36_v20  ;;  %v39_v27 = vld [vmem:[#allocation2 + $0x48] sm:$0xff]  ;;  %v130_v28 = vld [vmem:[#allocation2 + $0xc0] sm:$0xff] }
  0x19   :  { %v2703_v25 = vpack.c.bf16 %v129_v23, %v128_v22  ;;  %v131_v29 = vld [vmem:[#allocation2 + $0xc8] sm:$0xff]  ;;  %v2228_v30 = vpack.c.bf16 %v39_v27, %v38_v26  ;;  %v40_v32 = vld [vmem:[#allocation2 + $0x50] sm:$0xff]  ;;  %v41_v33 = vld [vmem:[#allocation2 + $0x58] sm:$0xff] }
  0x1a   :  { %2220 = vmatpush3.bf16.msra.mxu0 %v2219_v12  ;;  %v2708_v31 = vpack.c.bf16 %v131_v29, %v130_v28  ;;  %v132_v34 = vld [vmem:[#allocation2 + $0xd0] sm:$0xff]  ;;  %v133_v35 = vld [vmem:[#allocation2 + $0xd8] sm:$0xff]  ;;  %v2231_v36 = vpack.c.bf16 %v41_v33, %v40_v32  ;;  %v42_v38 = vld [vmem:[#allocation2 + $0x60] sm:$0xff] }
  0x1b   :  { %2244 = vmatpush3.bf16.msra.mxu1 %v2693_v13  ;;  %2221 = vmatprep.subr.bf16.mxu0 %v2648_v0  ;;  %v2713_v37 = vpack.c.bf16 %v133_v35, %v132_v34  ;;  %v43_v39 = vld [vmem:[#allocation2 + $0x68] sm:$0xff]  ;;  %v134_v40 = vld [vmem:[#allocation2 + $0xe0] sm:$0xff]  ;;  %v44_v44 = vld [vmem:[#allocation2 + $0x70] sm:$0xff] }
  0x1c   :  { %2245 = vmatprep.subr.bf16.mxu1 %v2648_v0  ;;  %v135_v41 = vld [vmem:[#allocation2 + $0xe8] sm:$0xff]  ;;  %v2234_v42 = vpack.c.bf16 %v43_v39, %v42_v38  ;;  %v45_v45 = vld [vmem:[#allocation2 + $0x78] sm:$0xff]  ;;  %v136_v46 = vld [vmem:[#allocation2 + $0xf0] sm:$0xff] }
  0x1d   :  { %v2718_v43 = vpack.c.bf16 %v135_v41, %v134_v40  ;;  %v137_v47 = vld [vmem:[#allocation2 + $0xf8] sm:$0xff]  ;;  %v2237_v48 = vpack.c.bf16 %v45_v45, %v44_v44  ;;  %v28_v50 = vld [vmem:[%s2971_s0] sm:$0xff]  ;;  %v755_v28 = vld [vmem:[#allocation2 + $0x108] sm:$0xff] }
  0x1e   :  { %2223 = vmatpush3.bf16.msra.mxu0 %v2222_v18  ;;  %v2723_v49 = vpack.c.bf16 %v137_v47, %v136_v46  ;;  %v1382_v51 = vld [vmem:[%s2973_s2] ss:$0 sm:$0xff]  ;;  %v756_v29 = vld [vmem:[#allocation2 + $0x110] sm:$0xff]  ;;  %v759_v34 = vld [vmem:[#allocation2 + $0x128] sm:$0xff] }
  0x1f   :  { %2247 = vmatpush3.bf16.msra.mxu1 %v2698_v19  ;;  %2224 = vmatprep.subr.bf16.mxu0 %v2648_v0  ;;  %v754_v27 = vld [vmem:[#allocation2 + $0x100] sm:$0xff]  ;;  %v846_v44 = vld [vmem:[#allocation2 + $0x188] sm:$0xff] }
  0x20   :  { %2248 = vmatprep.subr.bf16.mxu1 %v2648_v0  ;;  %v758_v33 = vld [vmem:[#allocation2 + $0x120] sm:$0xff] }
  0x21   :  { %v2438_v35 = vpack.c.bf16 %v759_v34, %v758_v33  ;;  %v938_v33 = vld [vmem:[#allocation2 + $0x220] sm:$0xff]  ;;  %v939_v34 = vld [vmem:[#allocation2 + $0x228] sm:$0xff] }
  0x22   :  { %2226 = vmatpush3.bf16.msra.mxu0 %v2225_v24 }
  0x23   :  { %2250 = vmatpush3.bf16.msra.mxu1 %v2703_v25  ;;  %2227 = vmatprep.subr.bf16.mxu0 %v2648_v0 }
  0x24   :  { %2251 = vmatprep.subr.bf16.mxu1 %v2648_v0 }
  0x26   :  { %2229 = vmatpush3.bf16.msra.mxu0 %v2228_v30  ;;  %v2432_v30 = vpack.c.bf16 %v755_v28, %v754_v27 }
  0x27   :  { %2253 = vmatpush3.bf16.msra.mxu1 %v2708_v31  ;;  %2230 = vmatprep.subr.bf16.mxu0 %v2648_v0 }
  0x28   :  { %2254 = vmatprep.subr.bf16.mxu1 %v2648_v0 }
  0x2a   :  { %2232 = vmatpush3.bf16.msra.mxu0 %v2231_v36  ;;  %v760_v36 = vld [vmem:[#allocation2 + $0x130] sm:$0xff] }
  0x2b   :  { %2256 = vmatpush3.bf16.msra.mxu1 %v2713_v37  ;;  %2233 = vmatprep.subr.bf16.mxu0 %v2648_v0 }
  0x2c   :  { %2257 = vmatprep.subr.bf16.mxu1 %v2648_v0 }
  0x2e   :  { %2235 = vmatpush3.bf16.msra.mxu0 %v2234_v42 }
  0x2f   :  { %2259 = vmatpush3.bf16.msra.mxu1 %v2718_v43  ;;  %2236 = vmatprep.subr.bf16.mxu0 %v2648_v0 }
  0x30   :  { %2260 = vmatprep.subr.bf16.mxu1 %v2648_v0 }
  0x32   :  { %2238 = vmatpush3.bf16.msra.mxu0 %v2237_v48  ;;  %v847_v48 = vld [vmem:[#allocation2 + $0x190] sm:$0xff] }
  0x33   :  { %2262 = vmatpush3.bf16.msra.mxu1 %v2723_v49  ;;  %2263 = vmatprep.subr.bf16.mxu0 %v2648_v0 }
  0x34   :  { %2287 = vmatprep.subr.bf16.mxu1 %v2648_v0 }
  0x35   :  { %1688 = vmatmul.mubr.f32.vlgmr.msra.gmra.mrb[0].mxu0 %v28_v50 }
  0x36   :  { %1723 = vmatmul.mubr.f32.vlgmr.msra.gmra.mrb[0].mxu1 %v2650_v1  ;;  %2265 = vmatpush3.bf16.msra.mxu0 %v2689_v9 }
  0x37   :  { %2266 = vmatprep.subr.bf16.mxu0 %v2648_v0  ;;  %1757 = vmatprep.mubr.msk.f32.mxu0 %vm2649_vm0, %v2650_v1 }
  0x38   :  { %2289 = vmatpush3.bf16.msra.mxu1 %v2689_v9  ;;  %1792 = vmatprep.mubr.msk.f32.mxu1 %vm2649_vm0, %v2650_v1 }
  0x39   :  { %2290 = vmatprep.subr.bf16.mxu1 %v2648_v0 }
  0x3a   :  { %2268 = vmatpush3.bf16.msra.mxu0 %v2693_v13 }
  0x3b   :  { %2269 = vmatprep.subr.bf16.mxu0 %v2648_v0 }
  0x3c   :  { %2292 = vmatpush3.bf16.msra.mxu1 %v2693_v13 }
  0x3d   :  { %2293 = vmatprep.subr.bf16.mxu1 %v2648_v0 }
  0x3e   :  { %2271 = vmatpush3.bf16.msra.mxu0 %v2698_v19 }
  0x3f   :  { %2272 = vmatprep.subr.bf16.mxu0 %v2648_v0 }
  0x40   :  { %2295 = vmatpush3.bf16.msra.mxu1 %v2698_v19 }
  0x41   :  { %2296 = vmatprep.subr.bf16.mxu1 %v2648_v0 }
  0x42   :  { %2274 = vmatpush3.bf16.msra.mxu0 %v2703_v25 }
  0x43   :  { %2275 = vmatprep.subr.bf16.mxu0 %v2648_v0 }
  0x44   :  { %2298 = vmatpush3.bf16.msra.mxu1 %v2703_v25 }
  0x45   :  { %2299 = vmatprep.subr.bf16.mxu1 %v2648_v0 }
  0x46   :  { %2277 = vmatpush3.bf16.msra.mxu0 %v2708_v31 }
  0x47   :  { %2278 = vmatprep.subr.bf16.mxu0 %v2648_v0 }
  0x48   :  { %2301 = vmatpush3.bf16.msra.mxu1 %v2708_v31 }
  0x49   :  { %2302 = vmatprep.subr.bf16.mxu1 %v2648_v0 }
  0x4a   :  { %2280 = vmatpush3.bf16.msra.mxu0 %v2713_v37 }
  0x4b   :  { %2281 = vmatprep.subr.bf16.mxu0 %v2648_v0 }
  0x4c   :  { %2304 = vmatpush3.bf16.msra.mxu1 %v2713_v37 }
  0x4d   :  { %2305 = vmatprep.subr.bf16.mxu1 %v2648_v0 }
  0x4e   :  { %2283 = vmatpush3.bf16.msra.mxu0 %v2718_v43 }
  0x4f   :  { %2284 = vmatprep.subr.bf16.mxu0 %v2648_v0 }
  0x50   :  { %2307 = vmatpush3.bf16.msra.mxu1 %v2718_v43 }
  0x51   :  { %2308 = vmatprep.subr.bf16.mxu1 %v2648_v0 }
  0x52   :  { %2286 = vmatpush3.bf16.msra.mxu0 %v2723_v49 }
  0x53   :  { %2311 = vmatprep.subr.bf16.mxu0 %v2648_v0 }
  0x54   :  { %2310 = vmatpush3.bf16.msra.mxu1 %v2723_v49 }
  0x55   :  { %2335 = vmatprep.subr.bf16.mxu1 %v2648_v0 }
 0x108   :  { %v117_v52 = vpop.f32.mrb[0].mxu0 }
 0x109   :  { %v2772_v53 = vadd.f32 %v1382_v51, %v117_v52  ;;  %v1689_v54 = vpop.f32.mrb[1].mxu0  ;;  %v204_v55 = vpop.f32.mrb[0].mxu1  ;;  %v849_v51 = vld [vmem:[#allocation2 + $0x1a0] sm:$0xff]  ;;  %v850_v52 = vld [vmem:[#allocation2 + $0x1a8] sm:$0xff] }
 0x10a   :  { %v1724_v56 = vpop.f32.mrb[1].mxu1  ;;  %v2462_v54 = vpack.c.bf16 %v850_v52, %v849_v51  ;;  %v949_v51 = vld [vmem:[#allocation2 + $0x278] sm:$0xff] }
 0x10b   :  { %v208_v57 = vadd.f32 %v204_v55, %v2772_v53  ;;  %v851_v55 = vld [vmem:[#allocation2 + $0x1b0] sm:$0xff]  ;;  %v852_v56 = vld [vmem:[#allocation2 + $0x1b8] sm:$0xff] }
 0x10d   :  { %2605 = vtanh.f32 %v208_v57  ;;  %v2465_v57 = vpack.c.bf16 %v852_v56, %v851_v55  ;;  %v1022_v55 = vld [vmem:[#allocation2 + $0x280] sm:$0xff]  ;;  %v1023_v56 = vld [vmem:[#allocation2 + $0x288] sm:$0xff] }
 0x117   :  { %v2606_v58 = vpop.eup %2605 }
 0x118   :  { %1758 = vmatmul.mubr.f32.vlgmr.msra.gmra.mrb[2].mxu0 %v2606_v58  ;;  %v853_v58 = vld [vmem:[#allocation2 + $0x1c0] sm:$0xff] }
 0x119   :  { %2313 = vmatpush3.bf16.msra.mxu0 %v2689_v9  ;;  %1827 = vmatprep.mubr.msk.f32.mxu0 %vm2649_vm0, %v2650_v1 }
 0x11a   :  { %2314 = vmatprep.subr.bf16.mxu0 %v2648_v0 }
 0x11d   :  { %2316 = vmatpush3.bf16.msra.mxu0 %v2693_v13 }
 0x11e   :  { %2317 = vmatprep.subr.bf16.mxu0 %v2648_v0 }
 0x121   :  { %2319 = vmatpush3.bf16.msra.mxu0 %v2698_v19 }
 0x122   :  { %2320 = vmatprep.subr.bf16.mxu0 %v2648_v0 }
 0x125   :  { %2322 = vmatpush3.bf16.msra.mxu0 %v2703_v25 }
 0x126   :  { %2323 = vmatprep.subr.bf16.mxu0 %v2648_v0 }
 0x129   :  { %2325 = vmatpush3.bf16.msra.mxu0 %v2708_v31 }
 0x12a   :  { %2326 = vmatprep.subr.bf16.mxu0 %v2648_v0 }
 0x12d   :  { %2328 = vmatpush3.bf16.msra.mxu0 %v2713_v37 }
 0x12e   :  { %2329 = vmatprep.subr.bf16.mxu0 %v2648_v0 }
 0x131   :  { %2331 = vmatpush3.bf16.msra.mxu0 %v2718_v43 }
 0x132   :  { %2332 = vmatprep.subr.bf16.mxu0 %v2648_v0 }
 0x135   :  { %2334 = vmatpush3.bf16.msra.mxu0 %v2723_v49 }
 0x136   :  { %2359 = vmatprep.subr.bf16.mxu0 %v2648_v0 }
 0x1eb   :  { %v276_v59 = vpop.f32.mrb[2].mxu0 }
 0x1ec   :  { %v281_v60 = vrot.slane %v276_v59, 7  ;;  %v1759_v61 = vpop.f32.mrb[3].mxu0  ;;  %v854_v59 = vld [vmem:[#allocation2 + $0x1c8] sm:$0xff] }
 0x1ed   :  { %v855_v61 = vld [vmem:[#allocation2 + $0x1d0] sm:$0xff] }
 0x1ee   :  { %v283_v62 = vadd.f32 %v281_v60, %v2772_v53  ;;  %v2468_v60 = vpack.c.bf16 %v854_v59, %v853_v58  ;;  %v2528_v58 = vpack.c.bf16 %v1023_v56, %v1022_v55  ;;  %v1024_v59 = vld [vmem:[#allocation2 + $0x290] sm:$0xff]  ;;  %v1200_v55 = vld [vmem:[#allocation2 + $0x388] sm:$0xff] }
 0x1ef   :  { %v1218_v56 = vld [vmem:[#allocation2 + $0x410] sm:$0xff] }
 0x1f0   :  { %2607 = vtanh.f32 %v283_v62  ;;  %v856_v62 = vld [vmem:[#allocation2 + $0x1d8] sm:$0xff] }
 0x1fa   :  { %v2608_v63 = vpop.eup %2607 }
 0x1fb   :  { %v286_v2 = vrot.slane %v2608_v63, 1  ;;  %v2471_v63 = vpack.c.bf16 %v856_v62, %v855_v61  ;;  %v1026_v62 = vld [vmem:[#allocation2 + $0x2a0] sm:$0xff] }
 0x1fd   :  { %1793 = vmatmul.mubr.f32.vlgmr.msra.gmra.mrb[2].mxu1 %v286_v2  ;;  %v857_v2 = vld [vmem:[#allocation2 + $0x1e0] sm:$0xff] }
 0x1fe   :  { %2337 = vmatpush3.bf16.msra.mxu1 %v2689_v9  ;;  %1862 = vmatprep.mubr.msk.f32.mxu1 %vm2649_vm0, %v2650_v1 }
 0x1ff   :  { %2338 = vmatprep.subr.bf16.mxu1 %v2648_v0 }
 0x202   :  { %2340 = vmatpush3.bf16.msra.mxu1 %v2693_v13 }
 0x203   :  { %2341 = vmatprep.subr.bf16.mxu1 %v2648_v0 }
 0x206   :  { %2343 = vmatpush3.bf16.msra.mxu1 %v2698_v19 }
 0x207   :  { %2344 = vmatprep.subr.bf16.mxu1 %v2648_v0 }
 0x20a   :  { %2346 = vmatpush3.bf16.msra.mxu1 %v2703_v25 }
 0x20b   :  { %2347 = vmatprep.subr.bf16.mxu1 %v2648_v0 }
 0x20e   :  { %2349 = vmatpush3.bf16.msra.mxu1 %v2708_v31 }
 0x20f   :  { %2350 = vmatprep.subr.bf16.mxu1 %v2648_v0 }
 0x212   :  { %2352 = vmatpush3.bf16.msra.mxu1 %v2713_v37 }
 0x213   :  { %2353 = vmatprep.subr.bf16.mxu1 %v2648_v0 }
 0x216   :  { %2355 = vmatpush3.bf16.msra.mxu1 %v2718_v43 }
 0x217   :  { %2356 = vmatprep.subr.bf16.mxu1 %v2648_v0 }
 0x21a   :  { %2358 = vmatpush3.bf16.msra.mxu1 %v2723_v49 }
 0x21b   :  { %2383 = vmatprep.subr.bf16.mxu1 %v2648_v0 }
 0x2d0   :  { %v354_v3 = vpop.f32.mrb[2].mxu1 }
 0x2d1   :  { %v359_v4 = vrot.slane %v354_v3, 6  ;;  %v1794_v5 = vpop.f32.mrb[3].mxu1  ;;  %v858_v3 = vld [vmem:[#allocation2 + $0x1e8] sm:$0xff] }
 0x2d2   :  { %v859_v5 = vld [vmem:[#allocation2 + $0x1f0] sm:$0xff] }
 0x2d3   :  { %v361_v6 = vadd.f32 %v359_v4, %v2772_v53  ;;  %v2474_v4 = vpack.c.bf16 %v858_v3, %v857_v2  ;;  %v1028_v3 = vld [vmem:[#allocation2 + $0x2b0] sm:$0xff] }
 0x2d5   :  { %2609 = vtanh.f32 %v361_v6  ;;  %v860_v6 = vld [vmem:[#allocation2 + $0x1f8] sm:$0xff] }
 0x2df   :  { %v2610_v7 = vpop.eup %2609 }
 0x2e0   :  { %v364_v8 = vrot.slane %v2610_v7, 2  ;;  %v2477_v7 = vpack.c.bf16 %v860_v6, %v859_v5  ;;  %v1030_v6 = vld [vmem:[#allocation2 + $0x2c0] sm:$0xff] }
 0x2e2   :  { %1828 = vmatmul.mubr.f32.vlgmr.msra.gmra.mrb[4].mxu0 %v364_v8  ;;  %v2889_v8 = vld [vmem:[%s2971_s0 + $0x8] sm:$0x1] }
 0x2e3   :  { %2361 = vmatpush3.bf16.msra.mxu0 %v2689_v9  ;;  %1897 = vmatprep.mubr.msk.f32.mxu0 %vm2649_vm0, %v2650_v1 }
 0x2e4   :  { %2362 = vmatprep.subr.bf16.mxu0 %v2648_v0 }
 0x2e7   :  { %2364 = vmatpush3.bf16.msra.mxu0 %v2693_v13 }
 0x2e8   :  { %2365 = vmatprep.subr.bf16.mxu0 %v2648_v0 }
 0x2eb   :  { %2367 = vmatpush3.bf16.msra.mxu0 %v2698_v19 }
 0x2ec   :  { %2368 = vmatprep.subr.bf16.mxu0 %v2648_v0 }
 0x2ef   :  { %2370 = vmatpush3.bf16.msra.mxu0 %v2703_v25 }
 0x2f0   :  { %2371 = vmatprep.subr.bf16.mxu0 %v2648_v0 }
 0x2f3   :  { %2373 = vmatpush3.bf16.msra.mxu0 %v2708_v31 }
 0x2f4   :  { %2374 = vmatprep.subr.bf16.mxu0 %v2648_v0 }
 0x2f7   :  { %2376 = vmatpush3.bf16.msra.mxu0 %v2713_v37 }
 0x2f8   :  { %2377 = vmatprep.subr.bf16.mxu0 %v2648_v0 }
 0x2fb   :  { %2379 = vmatpush3.bf16.msra.mxu0 %v2718_v43 }
 0x2fc   :  { %2380 = vmatprep.subr.bf16.mxu0 %v2648_v0 }
 0x2ff   :  { %2382 = vmatpush3.bf16.msra.mxu0 %v2723_v49 }
 0x300   :  { %2407 = vmatprep.subr.bf16.mxu0 %v2648_v0 }
 0x3b5   :  { %v432_v10 = vpop.f32.mrb[4].mxu0 }
 0x3b6   :  { %v437_v11 = vrot.slane %v432_v10, 5  ;;  %v1829_v12 = vpop.f32.mrb[5].mxu0  ;;  %v762_v10 = vld [vmem:[#allocation2 + $0x140] sm:$0xff] }
 0x3b8   :  { %v439_v14 = vadd.f32 %v437_v11, %v2772_v53  ;;  %v763_v11 = vld [vmem:[#allocation2 + $0x148] sm:$0xff] }
 0x3b9   :  { %v2444_v12 = vpack.c.bf16 %v763_v11, %v762_v10  ;;  %v1032_v11 = vld [vmem:[#allocation2 + $0x2d0] sm:$0xff] }
 0x3ba   :  { %2611 = vtanh.f32 %v439_v14  ;;  %v764_v14 = vld [vmem:[#allocation2 + $0x150] sm:$0xff] }
 0x3c4   :  { %v2612_v15 = vpop.eup %2611 }
 0x3c5   :  { %v442_v16 = vrot.slane %v2612_v15, 3  ;;  %v765_v15 = vld [vmem:[#allocation2 + $0x158] sm:$0xff] }
 0x3c7   :  { %1863 = vmatmul.mubr.f32.vlgmr.msra.gmra.mrb[4].mxu1 %v442_v16  ;;  %v2447_v16 = vpack.c.bf16 %v765_v15, %v764_v14  ;;  %v1034_v15 = vld [vmem:[#allocation2 + $0x2e0] sm:$0xff] }
 0x3c8   :  { %2385 = vmatpush3.bf16.msra.mxu1 %v2689_v9  ;;  %1932 = vmatprep.mubr.msk.f32.mxu1 %vm2649_vm0, %v2650_v1 }
 0x3c9   :  { %2386 = vmatprep.subr.bf16.mxu1 %v2648_v0 }
 0x3cc   :  { %2388 = vmatpush3.bf16.msra.mxu1 %v2693_v13 }
 0x3cd   :  { %2389 = vmatprep.subr.bf16.mxu1 %v2648_v0 }
 0x3d0   :  { %2391 = vmatpush3.bf16.msra.mxu1 %v2698_v19 }
 0x3d1   :  { %2392 = vmatprep.subr.bf16.mxu1 %v2648_v0 }
 0x3d4   :  { %2394 = vmatpush3.bf16.msra.mxu1 %v2703_v25 }
 0x3d5   :  { %2395 = vmatprep.subr.bf16.mxu1 %v2648_v0 }
 0x3d8   :  { %2397 = vmatpush3.bf16.msra.mxu1 %v2708_v31 }
 0x3d9   :  { %2398 = vmatprep.subr.bf16.mxu1 %v2648_v0 }
 0x3dc   :  { %2400 = vmatpush3.bf16.msra.mxu1 %v2713_v37 }
 0x3dd   :  { %2401 = vmatprep.subr.bf16.mxu1 %v2648_v0 }
 0x3e0   :  { %2403 = vmatpush3.bf16.msra.mxu1 %v2718_v43 }
 0x3e1   :  { %2404 = vmatprep.subr.bf16.mxu1 %v2648_v0 }
 0x3e4   :  { %2406 = vmatpush3.bf16.msra.mxu1 %v2723_v49 }
 0x3e5   :  { %2431 = vmatprep.subr.bf16.mxu1 %v2648_v0 }
 0x49a   :  { %v510_v17 = vpop.f32.mrb[4].mxu1 }
 0x49b   :  { %v515_v18 = vrot.slane %v510_v17, 4  ;;  %v1864_v20 = vpop.f32.mrb[5].mxu1  ;;  %v766_v17 = vld [vmem:[#allocation2 + $0x160] sm:$0xff] }
 0x49d   :  { %v517_v21 = vadd.f32 %v515_v18, %v2772_v53  ;;  %v767_v18 = vld [vmem:[#allocation2 + $0x168] sm:$0xff] }
 0x49e   :  { %v2450_v20 = vpack.c.bf16 %v767_v18, %v766_v17  ;;  %v1036_v18 = vld [vmem:[#allocation2 + $0x2f0] sm:$0xff] }
 0x49f   :  { %2613 = vtanh.f32 %v517_v21  ;;  %v768_v21 = vld [vmem:[#allocation2 + $0x170] sm:$0xff] }
 0x4a9   :  { %v2614_v22 = vpop.eup %2613 }
 0x4aa   :  { %v520_v23 = vrot.slane %v2614_v22, 4  ;;  %v769_v22 = vld [vmem:[#allocation2 + $0x178] sm:$0xff] }
 0x4ac   :  { %1898 = vmatmul.mubr.f32.vlgmr.msra.gmra.mrb[6].mxu0 %v520_v23  ;;  %v2453_v23 = vpack.c.bf16 %v769_v22, %v768_v21  ;;  %v1039_v22 = vld [vmem:[#allocation2 + $0x300] sm:$0xff] }
 0x4ad   :  { %2409 = vmatpush3.bf16.msra.mxu0 %v2689_v9  ;;  %1967 = vmatprep.mubr.msk.f32.mxu0 %vm2649_vm0, %v2650_v1 }
 0x4ae   :  { %2410 = vmatprep.subr.bf16.mxu0 %v2648_v0 }
 0x4b1   :  { %2412 = vmatpush3.bf16.msra.mxu0 %v2693_v13 }
 0x4b2   :  { %2413 = vmatprep.subr.bf16.mxu0 %v2648_v0 }
 0x4b5   :  { %2415 = vmatpush3.bf16.msra.mxu0 %v2698_v19 }
 0x4b6   :  { %2416 = vmatprep.subr.bf16.mxu0 %v2648_v0 }
 0x4b9   :  { %2418 = vmatpush3.bf16.msra.mxu0 %v2703_v25 }
 0x4ba   :  { %2419 = vmatprep.subr.bf16.mxu0 %v2648_v0 }
 0x4bd   :  { %2421 = vmatpush3.bf16.msra.mxu0 %v2708_v31  ;;  %v757_v31 = vld [vmem:[#allocation2 + $0x118] sm:$0xff] }
 0x4be   :  { %2422 = vmatprep.subr.bf16.mxu0 %v2648_v0  ;;  %v2435_v32 = vpack.c.bf16 %v757_v31, %v756_v29  ;;  %v937_v31 = vld [vmem:[#allocation2 + $0x218] sm:$0xff] }
 0x4c1   :  { %2424 = vmatpush3.bf16.msra.mxu0 %v2713_v37  ;;  %v761_v37 = vld [vmem:[#allocation2 + $0x138] sm:$0xff] }
 0x4c2   :  { %2425 = vmatprep.subr.bf16.mxu0 %v2648_v0  ;;  %v2441_v38 = vpack.c.bf16 %v761_v37, %v760_v36  ;;  %v941_v36 = vld [vmem:[#allocation2 + $0x238] sm:$0xff] }
 0x4c5   :  { %2427 = vmatpush3.bf16.msra.mxu0 %v2718_v43  ;;  %v845_v43 = vld [vmem:[#allocation2 + $0x180] sm:$0xff] }
 0x4c6   :  { %2428 = vmatprep.subr.bf16.mxu0 %v2648_v0  ;;  %v2456_v46 = vpack.c.bf16 %v846_v44, %v845_v43 }
 0x4c9   :  { %2430 = vmatpush3.bf16.msra.mxu0 %v2723_v49  ;;  %v848_v49 = vld [vmem:[#allocation2 + $0x198] sm:$0xff] }
 0x4ca   :  { %2455 = vmatprep.subr.bf16.mxu0 %v2648_v0  ;;  %v2459_v50 = vpack.c.bf16 %v848_v49, %v847_v48  ;;  %v861_v49 = vld [vmem:[%s2973_s2 + $0x2] sm:$0x1] }
 0x57f   :  { %v588_v9 = vpop.f32.mrb[6].mxu0 }
 0x580   :  { %v593_v13 = vrot.slane %v588_v9, 3  ;;  %v1899_v19 = vpop.f32.mrb[7].mxu0 }
 0x582   :  { %v595_v24 = vadd.f32 %v593_v13, %v2772_v53 }
 0x584   :  { %2615 = vtanh.f32 %v595_v24 }
 0x58e   :  { %v2616_v25 = vpop.eup %2615 }
 0x58f   :  { %v598_v26 = vrot.slane %v2616_v25, 5  ;;  %v934_v25 = vld [vmem:[#allocation2 + $0x200] sm:$0xff] }
 0x591   :  { %1933 = vmatmul.mubr.f32.vlgmr.msra.gmra.mrb[6].mxu1 %v598_v26  ;;  %v935_v26 = vld [vmem:[#allocation2 + $0x208] sm:$0xff] }
 0x592   :  { %2002 = vmatprep.mubr.msk.f32.mxu1 %vm2649_vm0, %v2650_v1  ;;  %2433 = vmatpush3.bf16.msra.mxu1 %v2432_v30  ;;  %v2480_v28 = vpack.c.bf16 %v935_v26, %v934_v25  ;;  %v936_v30 = vld [vmem:[#allocation2 + $0x210] sm:$0xff]  ;;  %v1043_v25 = vld [vmem:[#allocation2 + $0x320] sm:$0xff]  ;;  %v1044_v26 = vld [vmem:[#allocation2 + $0x328] sm:$0xff] }
 0x593   :  { %2434 = vmatprep.subr.bf16.mxu1 %v2648_v0 }
 0x596   :  { %2436 = vmatpush3.bf16.msra.mxu1 %v2435_v32  ;;  %v2483_v32 = vpack.c.bf16 %v937_v31, %v936_v30  ;;  %v1047_v31 = vld [vmem:[#allocation2 + $0x340] sm:$0xff] }
 0x597   :  { %2437 = vmatprep.subr.bf16.mxu1 %v2648_v0 }
 0x59a   :  { %2439 = vmatpush3.bf16.msra.mxu1 %v2438_v35  ;;  %v940_v35 = vld [vmem:[#allocation2 + $0x230] sm:$0xff] }
 0x59b   :  { %2440 = vmatprep.subr.bf16.mxu1 %v2648_v0  ;;  %v2489_v37 = vpack.c.bf16 %v941_v36, %v940_v35  ;;  %v1051_v36 = vld [vmem:[#allocation2 + $0x360] sm:$0xff] }
 0x59e   :  { %2442 = vmatpush3.bf16.msra.mxu1 %v2441_v38  ;;  %v942_v38 = vld [vmem:[#allocation2 + $0x240] sm:$0xff] }
 0x59f   :  { %2443 = vmatprep.subr.bf16.mxu1 %v2648_v0 }
 0x5a2   :  { %2445 = vmatpush3.bf16.msra.mxu1 %v2444_v12  ;;  %v1033_v12 = vld [vmem:[#allocation2 + $0x2d8] sm:$0xff] }
 0x5a3   :  { %2446 = vmatprep.subr.bf16.mxu1 %v2648_v0  ;;  %v2543_v14 = vpack.c.bf16 %v1033_v12, %v1032_v11  ;;  %v1206_v11 = vld [vmem:[#allocation2 + $0x3b8] sm:$0xff] }
 0x5a6   :  { %2448 = vmatpush3.bf16.msra.mxu1 %v2447_v16  ;;  %v1035_v16 = vld [vmem:[#allocation2 + $0x2e8] sm:$0xff] }
 0x5a7   :  { %2449 = vmatprep.subr.bf16.mxu1 %v2648_v0  ;;  %v2546_v17 = vpack.c.bf16 %v1035_v16, %v1034_v15  ;;  %v1224_v15 = vld [vmem:[#allocation2 + $0x440] sm:$0xff]  ;;  %v1225_v16 = vld [vmem:[#allocation2 + $0x448] sm:$0xff] }
 0x5aa   :  { %2451 = vmatpush3.bf16.msra.mxu1 %v2450_v20  ;;  %v1037_v20 = vld [vmem:[#allocation2 + $0x2f8] sm:$0xff] }
 0x5ab   :  { %2452 = vmatprep.subr.bf16.mxu1 %v2648_v0  ;;  %v2549_v21 = vpack.c.bf16 %v1037_v20, %v1036_v18  ;;  %v1208_v18 = vld [vmem:[#allocation2 + $0x3c8] sm:$0xff]  ;;  %v2564_v20 = vpack.c.bf16 %v1225_v16, %v1224_v15 }
 0x5ae   :  { %2454 = vmatpush3.bf16.msra.mxu1 %v2453_v23  ;;  %v1040_v23 = vld [vmem:[#allocation2 + $0x308] sm:$0xff] }
 0x5af   :  { %2479 = vmatprep.subr.bf16.mxu1 %v2648_v0 }
 0x664   :  { %v666_v39 = vpop.f32.mrb[6].mxu1 }
 0x665   :  { %v671_v40 = vrot.slane %v666_v39, 2  ;;  %v1934_v41 = vpop.f32.mrb[7].mxu1  ;;  %v943_v39 = vld [vmem:[#allocation2 + $0x248] sm:$0xff] }
 0x666   :  { %v944_v41 = vld [vmem:[#allocation2 + $0x250] sm:$0xff] }
 0x667   :  { %v673_v42 = vadd.f32 %v671_v40, %v2772_v53  ;;  %v2492_v40 = vpack.c.bf16 %v943_v39, %v942_v38  ;;  %v1053_v39 = vld [vmem:[#allocation2 + $0x370] sm:$0xff] }
 0x669   :  { %2617 = vtanh.f32 %v673_v42  ;;  %v945_v42 = vld [vmem:[#allocation2 + $0x258] sm:$0xff] }
 0x673   :  { %v2618_v45 = vpop.eup %2617 }
 0x674   :  { %v676_v47 = vrot.slane %v2618_v45, 6  ;;  %v2495_v45 = vpack.c.bf16 %v945_v42, %v944_v41  ;;  %v770_v42 = vld [vmem:[%s2973_s2 + $0x1] sm:$0x1] }
 0x676   :  { %1968 = vmatmul.mubr.f32.vlgmr.msra.gmra.mrb[8].mxu0 %v676_v47  ;;  %v947_v47 = vld [vmem:[#allocation2 + $0x268] sm:$0xff] }
 0x677   :  { %2457 = vmatpush3.bf16.msra.mxu0 %v2456_v46  ;;  %2037 = vmatprep.mubr.msk.f32.mxu0 %vm2649_vm0, %v2650_v1  ;;  %v946_v46 = vld [vmem:[#allocation2 + $0x260] sm:$0xff] }
 0x678   :  { %2458 = vmatprep.subr.bf16.mxu0 %v2648_v0  ;;  %v2498_v48 = vpack.c.bf16 %v947_v47, %v946_v46  ;;  %v950_v46 = vld [vmem:[%s2973_s2 + $0x3] sm:$0x1] }
 0x67b   :  { %2460 = vmatpush3.bf16.msra.mxu0 %v2459_v50  ;;  %v948_v50 = vld [vmem:[#allocation2 + $0x270] sm:$0xff] }
 0x67c   :  { %2461 = vmatprep.subr.bf16.mxu0 %v2648_v0 }
 0x67f   :  { %2463 = vmatpush3.bf16.msra.mxu0 %v2462_v54  ;;  %v2501_v54 = vpack.c.bf16 %v949_v51, %v948_v50  ;;  %v1216_v50 = vld [vmem:[#allocation2 + $0x400] sm:$0xff]  ;;  %v1217_v51 = vld [vmem:[#allocation2 + $0x408] sm:$0xff] }
 0x680   :  { %2464 = vmatprep.subr.bf16.mxu0 %v2648_v0 }
 0x683   :  { %2466 = vmatpush3.bf16.msra.mxu0 %v2465_v57 }
 0x684   :  { %2467 = vmatprep.subr.bf16.mxu0 %v2648_v0 }
 0x687   :  { %2469 = vmatpush3.bf16.msra.mxu0 %v2468_v60  ;;  %v1025_v60 = vld [vmem:[#allocation2 + $0x298] sm:$0xff] }
 0x688   :  { %2470 = vmatprep.subr.bf16.mxu0 %v2648_v0  ;;  %v2531_v61 = vpack.c.bf16 %v1025_v60, %v1024_v59  ;;  %v1201_v59 = vld [vmem:[#allocation2 + $0x390] sm:$0xff]  ;;  %v1202_v60 = vld [vmem:[#allocation2 + $0x398] sm:$0xff] }
 0x68b   :  { %2472 = vmatpush3.bf16.msra.mxu0 %v2471_v63  ;;  %v1027_v63 = vld [vmem:[#allocation2 + $0x2a8] sm:$0xff] }
 0x68c   :  { %2473 = vmatprep.subr.bf16.mxu0 %v2648_v0  ;;  %v2534_v2 = vpack.c.bf16 %v1027_v63, %v1026_v62  ;;  %v2579_v62 = vpack.c.bf16 %v1202_v60, %v1201_v59  ;;  %v1220_v63 = vld [vmem:[#allocation2 + $0x420] sm:$0xff] }
 0x68f   :  { %2475 = vmatpush3.bf16.msra.mxu0 %v2474_v4  ;;  %v1029_v4 = vld [vmem:[#allocation2 + $0x2b8] sm:$0xff] }
 0x690   :  { %2476 = vmatprep.subr.bf16.mxu0 %v2648_v0  ;;  %v2537_v5 = vpack.c.bf16 %v1029_v4, %v1028_v3  ;;  %v1204_v3 = vld [vmem:[#allocation2 + $0x3a8] sm:$0xff] }
 0x693   :  { %2478 = vmatpush3.bf16.msra.mxu0 %v2477_v7  ;;  %v1031_v7 = vld [vmem:[#allocation2 + $0x2c8] sm:$0xff] }
 0x694   :  { %2503 = vmatprep.subr.bf16.mxu0 %v2648_v0  ;;  %v2540_v10 = vpack.c.bf16 %v1031_v7, %v1030_v6  ;;  %v1222_v6 = vld [vmem:[#allocation2 + $0x430] sm:$0xff]  ;;  %v1223_v7 = vld [vmem:[#allocation2 + $0x438] sm:$0xff] }
 0x695   :  { %v2561_v12 = vpack.c.bf16 %v1223_v7, %v1222_v6 }
 0x696   :  { %2038 = vmatmul.mubr.f32.vlgmr.msra.gmra.mrb[10].mxu0 %v2889_v8 }
 0x697   :  { %2107 = vmatprep.mubr.msk.f32.mxu0 %vm2649_vm0, %v2650_v1 }
 0x749   :  { %v744_v9 = vpop.f32.mrb[8].mxu0 }
 0x74a   :  { %v749_v13 = vrot.slane %v744_v9, 1  ;;  %v1969_v19 = vpop.f32.mrb[9].mxu0  ;;  %v2504_v9 = vpack.c.bf16 %v1040_v23, %v1039_v22  ;;  %v1226_v22 = vld [vmem:[#allocation2 + $0x450] sm:$0xff]  ;;  %v1227_v23 = vld [vmem:[#allocation2 + $0x458] sm:$0xff] }
 0x74b   :  { %v1042_v19 = vld [vmem:[#allocation2 + $0x318] sm:$0xff] }
 0x74c   :  { %v751_v24 = vadd.f32 %v749_v13, %v2772_v53  ;;  %v2486_v53 = vpack.c.bf16 %v939_v34, %v938_v33  ;;  %v1041_v13 = vld [vmem:[#allocation2 + $0x310] sm:$0xff]  ;;  %2505 = vmatpush3.bf16.msra.mxu0 %v2504_v9 }
 0x74d   :  { %2506 = vmatprep.subr.bf16.mxu0 %v2648_v0  ;;  %v1049_v34 = vld [vmem:[#allocation2 + $0x350] sm:$0xff] }
 0x74e   :  { %2619 = vtanh.f32 %v751_v24  ;;  %v2507_v24 = vpack.c.bf16 %v1042_v19, %v1041_v13  ;;  %v1209_v9 = vld [vmem:[#allocation2 + $0x3d0] sm:$0xff]  ;;  %v1210_v13 = vld [vmem:[#allocation2 + $0x3d8] sm:$0xff]  ;;  %v2567_v19 = vpack.c.bf16 %v1227_v23, %v1226_v22 }
 0x750   :  { %2508 = vmatpush3.bf16.msra.mxu0 %v2507_v24  ;;  %v2591_v24 = vpack.c.bf16 %v1210_v13, %v1209_v9 }
 0x751   :  { %2509 = vmatprep.subr.bf16.mxu0 %v2648_v0 }
 0x758   :  { %v2620_v27 = vpop.eup %2619 }
 0x759   :  { %v772_v29 = vrot.slane %v2620_v27, 7  ;;  %v2510_v27 = vpack.c.bf16 %v1044_v26, %v1043_v25  ;;  %v1228_v25 = vld [vmem:[#allocation2 + $0x460] sm:$0xff]  ;;  %v1229_v26 = vld [vmem:[#allocation2 + $0x468] sm:$0xff] }
 0x75b   :  { %2003 = vmatmul.mubr.f32.vlgmr.msra.gmra.mrb[8].mxu1 %v772_v29  ;;  %v1046_v29 = vld [vmem:[#allocation2 + $0x338] sm:$0xff]  ;;  %2511 = vmatpush3.bf16.msra.mxu0 %v2510_v27  ;;  %v2570_v27 = vpack.c.bf16 %v1229_v26, %v1228_v25 }
 0x75c   :  { %2481 = vmatpush3.bf16.msra.mxu1 %v2480_v28  ;;  %2072 = vmatprep.mubr.msk.f32.mxu1 %vm2649_vm0, %v2650_v1  ;;  %v1045_v28 = vld [vmem:[#allocation2 + $0x330] sm:$0xff] }
 0x75d   :  { %2482 = vmatprep.subr.bf16.mxu1 %v2648_v0  ;;  %v2513_v30 = vpack.c.bf16 %v1046_v29, %v1045_v28  ;;  %2512 = vmatprep.subr.bf16.mxu0 %v2648_v0  ;;  %v1211_v28 = vld [vmem:[#allocation2 + $0x3e0] sm:$0xff]  ;;  %v1212_v29 = vld [vmem:[#allocation2 + $0x3e8] sm:$0xff] }
 0x75f   :  { %2514 = vmatpush3.bf16.msra.mxu0 %v2513_v30  ;;  %v2594_v30 = vpack.c.bf16 %v1212_v29, %v1211_v28 }
 0x760   :  { %2484 = vmatpush3.bf16.msra.mxu1 %v2483_v32  ;;  %v1048_v32 = vld [vmem:[#allocation2 + $0x348] sm:$0xff]  ;;  %2515 = vmatprep.subr.bf16.mxu0 %v2648_v0 }
 0x761   :  { %2485 = vmatprep.subr.bf16.mxu1 %v2648_v0  ;;  %v2516_v33 = vpack.c.bf16 %v1048_v32, %v1047_v31  ;;  %v1230_v31 = vld [vmem:[#allocation2 + $0x470] sm:$0xff]  ;;  %v1231_v32 = vld [vmem:[#allocation2 + $0x478] sm:$0xff] }
 0x763   :  { %2517 = vmatpush3.bf16.msra.mxu0 %v2516_v33  ;;  %v2573_v33 = vpack.c.bf16 %v1231_v32, %v1230_v31 }
 0x764   :  { %2487 = vmatpush3.bf16.msra.mxu1 %v2486_v53  ;;  %v1050_v53 = vld [vmem:[#allocation2 + $0x358] sm:$0xff]  ;;  %2518 = vmatprep.subr.bf16.mxu0 %v2648_v0 }
 0x765   :  { %2488 = vmatprep.subr.bf16.mxu1 %v2648_v0  ;;  %v2519_v35 = vpack.c.bf16 %v1050_v53, %v1049_v34  ;;  %v1213_v34 = vld [vmem:[#allocation2 + $0x3f0] sm:$0xff]  ;;  %v1214_v53 = vld [vmem:[#allocation2 + $0x3f8] sm:$0xff] }
 0x767   :  { %2520 = vmatpush3.bf16.msra.mxu0 %v2519_v35  ;;  %v2597_v35 = vpack.c.bf16 %v1214_v53, %v1213_v34 }
 0x768   :  { %2490 = vmatpush3.bf16.msra.mxu1 %v2489_v37  ;;  %v1052_v37 = vld [vmem:[#allocation2 + $0x368] sm:$0xff]  ;;  %2521 = vmatprep.subr.bf16.mxu0 %v2648_v0 }
 0x769   :  { %2491 = vmatprep.subr.bf16.mxu1 %v2648_v0  ;;  %v928_v43 = vpop.f32.mrb[10].mxu0  ;;  %v2522_v38 = vpack.c.bf16 %v1052_v37, %v1051_v36 }
 0x76a   :  { %v2039_v44 = vpop.f32.mrb[11].mxu0  ;;  %v929_v52 = vadd.f32 %v928_v43, %v861_v49 }
 0x76b   :  { %2523 = vmatpush3.bf16.msra.mxu0 %v2522_v38 }
 0x76c   :  { %2493 = vmatpush3.bf16.msra.mxu1 %v2492_v40  ;;  %v932_v57 = vmax.f32 %v929_v52, 0.0  ;;  %2524 = vmatprep.subr.bf16.mxu0 %v2648_v0  ;;  %v1054_v40 = vld [vmem:[#allocation2 + $0x378] sm:$0xff]  ;;  %v1199_v52 = vld [vmem:[#allocation2 + $0x380] sm:$0xff] }
 0x76d   :  { %2494 = vmatprep.subr.bf16.mxu1 %v2648_v0  ;;  %v2525_v41 = vpack.c.bf16 %v1054_v40, %v1053_v39  ;;  %v1195_v39 = vld [vmem:[%s2973_s2 + $0x4] sm:$0x1] }
 0x76f   :  { %2526 = vmatpush3.bf16.msra.mxu0 %v2525_v41 }
 0x770   :  { %2496 = vmatpush3.bf16.msra.mxu1 %v2495_v45  ;;  %2551 = vmatprep.subr.bf16.mxu0 %v2648_v0 }
 0x771   :  { %2497 = vmatprep.subr.bf16.mxu1 %v2648_v0 }
 0x774   :  { %2499 = vmatpush3.bf16.msra.mxu1 %v2498_v48 }
 0x775   :  { %2500 = vmatprep.subr.bf16.mxu1 %v2648_v0 }
 0x778   :  { %2502 = vmatpush3.bf16.msra.mxu1 %v2501_v54  ;;  %v2552_v54 = vpack.c.bf16 %v1217_v51, %v1216_v50 }
 0x779   :  { %2527 = vmatprep.subr.bf16.mxu1 %v2648_v0 }
 0x77b   :  { %2073 = vmatmul.mubr.f32.vlgmr.msra.gmra.mrb[10].mxu1 %v932_v57  ;;  %v1219_v57 = vld [vmem:[#allocation2 + $0x418] sm:$0xff] }
 0x77c   :  { %2529 = vmatpush3.bf16.msra.mxu1 %v2528_v58  ;;  %2142 = vmatprep.mubr.msk.f32.mxu1 %vm2649_vm0, %v2650_v1  ;;  %v2576_v58 = vpack.c.bf16 %v1200_v55, %v1199_v52 }
 0x77d   :  { %2530 = vmatprep.subr.bf16.mxu1 %v2648_v0 }
 0x780   :  { %2532 = vmatpush3.bf16.msra.mxu1 %v2531_v61  ;;  %v2555_v61 = vpack.c.bf16 %v1219_v57, %v1218_v56 }
 0x781   :  { %2533 = vmatprep.subr.bf16.mxu1 %v2648_v0 }
 0x784   :  { %2535 = vmatpush3.bf16.msra.mxu1 %v2534_v2  ;;  %v1221_v2 = vld [vmem:[#allocation2 + $0x428] sm:$0xff] }
 0x785   :  { %2536 = vmatprep.subr.bf16.mxu1 %v2648_v0  ;;  %v2558_v4 = vpack.c.bf16 %v1221_v2, %v1220_v63 }
 0x788   :  { %2538 = vmatpush3.bf16.msra.mxu1 %v2537_v5 }
 0x789   :  { %2539 = vmatprep.subr.bf16.mxu1 %v2648_v0 }
 0x78c   :  { %2541 = vmatpush3.bf16.msra.mxu1 %v2540_v10  ;;  %v1205_v10 = vld [vmem:[#allocation2 + $0x3b0] sm:$0xff] }
 0x78d   :  { %2542 = vmatprep.subr.bf16.mxu1 %v2648_v0 }
 0x790   :  { %2544 = vmatpush3.bf16.msra.mxu1 %v2543_v14  ;;  %v2585_v14 = vpack.c.bf16 %v1206_v11, %v1205_v10 }
 0x791   :  { %2545 = vmatprep.subr.bf16.mxu1 %v2648_v0 }
 0x794   :  { %2547 = vmatpush3.bf16.msra.mxu1 %v2546_v17  ;;  %v1207_v17 = vld [vmem:[#allocation2 + $0x3c0] sm:$0xff] }
 0x795   :  { %2548 = vmatprep.subr.bf16.mxu1 %v2648_v0 }
 0x798   :  { %2550 = vmatpush3.bf16.msra.mxu1 %v2549_v21  ;;  %v2588_v21 = vpack.c.bf16 %v1208_v18, %v1207_v17 }
 0x799   :  { %2575 = vmatprep.subr.bf16.mxu1 %v2648_v0 }
 0x82e   :  { %v840_v43 = vpop.f32.mrb[8].mxu1 }
 0x82f   :  { %v841_v44 = vadd.f32 %v840_v43, %v770_v42  ;;  %v2004_v45 = vpop.f32.mrb[9].mxu1 }
 0x831   :  { %1375 = vst [vmem:[%s2974_s3 + $0x1] sm:$0x1] %v841_v44  ;;  %2143 = vmatmul.mubr.f32.vlgmr.msra.gmra.mrb[12].mxu1 %v841_v44 }
 0x832   :  { %2212 = vmatprep.mubr.msk.f32.mxu1 %vm2649_vm0, %v2650_v1  ;;  %2577 = vmatpush3.bf16.msra.mxu1 %v2576_v58 }
 0x833   :  { %2578 = vmatprep.subr.bf16.mxu1 %v2648_v0 }
 0x836   :  { %2580 = vmatpush3.bf16.msra.mxu1 %v2579_v62 }
 0x837   :  { %2581 = vmatprep.subr.bf16.mxu1 %v2648_v0 }
 0x84e   :  { %v1017_v47 = vpop.f32.mrb[10].mxu1 }
 0x84f   :  { %v1018_v48 = vadd.f32 %v1017_v47, %v950_v46  ;;  %v2074_v49 = vpop.f32.mrb[11].mxu1  ;;  %v1372_v46 = vld [vmem:[%s2973_s2 + $0x5] sm:$0x1] }
 0x851   :  { %1376 = vst [vmem:[%s2974_s3 + $0x2] sm:$0x1] %v1018_v48  ;;  %2108 = vmatmul.mubr.f32.vlgmr.msra.gmra.mrb[12].mxu0 %v1018_v48 }
 0x852   :  { %2177 = vmatprep.mubr.msk.f32.mxu0 %vm2649_vm0, %v2650_v1  ;;  %2553 = vmatpush3.bf16.msra.mxu0 %v2552_v54  ;;  %v1203_v1 = vld [vmem:[#allocation2 + $0x3a0] sm:$0xff] }
 0x853   :  { %2554 = vmatprep.subr.bf16.mxu0 %v2648_v0  ;;  %v2582_v5 = vpack.c.bf16 %v1204_v3, %v1203_v1 }
 0x855   :  { %2583 = vmatpush3.bf16.msra.mxu1 %v2582_v5 }
 0x856   :  { %2556 = vmatpush3.bf16.msra.mxu0 %v2555_v61  ;;  %2584 = vmatprep.subr.bf16.mxu1 %v2648_v0 }
 0x857   :  { %2557 = vmatprep.subr.bf16.mxu0 %v2648_v0 }
 0x859   :  { %2586 = vmatpush3.bf16.msra.mxu1 %v2585_v14 }
 0x85a   :  { %2559 = vmatpush3.bf16.msra.mxu0 %v2558_v4  ;;  %2587 = vmatprep.subr.bf16.mxu1 %v2648_v0 }
 0x85b   :  { %2560 = vmatprep.subr.bf16.mxu0 %v2648_v0 }
 0x85d   :  { %2589 = vmatpush3.bf16.msra.mxu1 %v2588_v21 }
 0x85e   :  { %2562 = vmatpush3.bf16.msra.mxu0 %v2561_v12  ;;  %2590 = vmatprep.subr.bf16.mxu1 %v2648_v0 }
 0x85f   :  { %2563 = vmatprep.subr.bf16.mxu0 %v2648_v0 }
 0x861   :  { %2592 = vmatpush3.bf16.msra.mxu1 %v2591_v24 }
 0x862   :  { %2565 = vmatpush3.bf16.msra.mxu0 %v2564_v20  ;;  %2593 = vmatprep.subr.bf16.mxu1 %v2648_v0 }
 0x863   :  { %2566 = vmatprep.subr.bf16.mxu0 %v2648_v0 }
 0x865   :  { %2595 = vmatpush3.bf16.msra.mxu1 %v2594_v30 }
 0x866   :  { %2568 = vmatpush3.bf16.msra.mxu0 %v2567_v19  ;;  %2596 = vmatprep.subr.bf16.mxu1 %v2648_v0 }
 0x867   :  { %2569 = vmatprep.subr.bf16.mxu0 %v2648_v0 }
 0x869   :  { %2598 = vmatpush3.bf16.msra.mxu1 %v2597_v35 }
 0x86a   :  { %2571 = vmatpush3.bf16.msra.mxu0 %v2570_v27 }
 0x86b   :  { %2572 = vmatprep.subr.bf16.mxu0 %v2648_v0 }
 0x86e   :  { %2574 = vmatpush3.bf16.msra.mxu0 %v2573_v33 }
 0x871   :  { %2178 = vmatmul.mubr.f32.vlgmr.msra.gmra.mrb[14].mxu0 %v2889_v8 }
 0x904   :  { %v1191_v36 = vpop.f32.mrb[12].mxu1 }
 0x905   :  { %v2144_v37 = vpop.f32.mrb[13].mxu1 }
 0x924   :  { %v1121_v38 = vpop.f32.mrb[12].mxu0 }
 0x925   :  { %v1192_v40 = vadd.f32 %v1191_v36, %v1121_v38  ;;  %v2109_v41 = vpop.f32.mrb[13].mxu0 }
 0x927   :  { %v1196_v42 = vadd.f32 %v1195_v39, %v1192_v40 }
 0x929   :  { %v1197_v43 = vmax.f32 %v1196_v42, 0.0 }
 0x92b   :  { %2213 = vmatmul.mubr.f32.vlgmr.msra.gmra.mrb[14].mxu1 %v1197_v43 }
 0x944   :  { %v1298_v0 = vpop.f32.mrb[14].mxu0 }
 0x945   :  { %v2179_v44 = vpop.f32.mrb[15].mxu0 }
 0x9fe   :  { %v1368_v45 = vpop.f32.mrb[14].mxu1 }
 0x9ff   :  { %v1369_v8 = vadd.f32 %v1368_v45, %v1298_v0  ;;  %v2214_v47 = vpop.f32.mrb[15].mxu1 }
 0xa01   :  { %v1373_v48 = vadd.f32 %v1372_v46, %v1369_v8 }
 0xa03   :  { %1374 = vst [vmem:[%s2974_s3] sm:$0x1] %v1373_v48 }
 0xa04   :  { %1381 = vsyncpa [#allocation3], 1 }

</bundles_post_ra>
